<compile_context>
chip_gen: v7x
topology: tpu7x:2x2x1
jax: 0.10.0
libtpu: 0.0.40
codegen_flags: <defaults>
</compile_context>

<pallas_src>
import math

import jax
import jax.numpy as jnp
from jax.experimental import pallas as pl
from jax.experimental.pallas import tpu as pltpu

_LANE = 128
_SUBLANE = 8
# ~4 MiB blocks amortize the ~600-cycle per-grid-step overhead (512+ wide
# tiles reach ~85% of HBM roofline) while keeping in+out double-buffered
# blocks (4 x 4 MiB = 16 MiB) under every chip's scoped-VMEM default.
_TARGET_BLOCK_BYTES = 4 * 1024 * 1024


def _abs_kernel(x_ref, o_ref):
    # Elementwise |x| on the whole VMEM tile (pure VPU op, no cross-lane work).
    o_ref[...] = jnp.abs(x_ref[...])


def _lane_dense_2d(total: int) -> tuple[int, int]:
    """Pick (rows, cols) with cols a multiple of 128 (lane-dense last dim) and
    rows >= 8 when possible so every vreg is fully packed."""
    for cols in (1024, 512, 256, _LANE):
        if total % cols == 0 and (total // cols) >= _SUBLANE:
            return total // cols, cols
    if total % _LANE == 0:
        return total // _LANE, _LANE
    # Fallback: single row equal to the full array extent (block == full array
    # dims satisfies the (8,128) BlockSpec rule).  Lane-sparse but correct.
    return 1, total


def pallas_abs(x: jax.Array) -> jax.Array:
    """Elementwise abs via Pallas. Semantics match torch.abs(input)."""
    orig_shape = x.shape
    total = math.prod(orig_shape) if orig_shape else 1
    rows, cols = _lane_dense_2d(total)
    x2d = x.reshape(rows, cols)  # contiguous flatten — layout plumbing only

    slab_bytes = rows * cols * x2d.dtype.itemsize
    if slab_bytes <= _TARGET_BLOCK_BYTES or rows <= _SUBLANE:
        # Small case: whole array = one lane-dense VMEM tile, single grid
        # point (grid=()), zero per-step pipeline overhead.
        # TODO(synk): at this size the call is pure fixed overhead — in a real
        # pipeline, fuse abs into a neighboring kernel / let XLA fuse jnp.abs.
        out2d = pl.pallas_call(
            _abs_kernel,
            out_shape=jax.ShapeDtypeStruct(x2d.shape, x2d.dtype),
            in_specs=[pl.BlockSpec(x2d.shape, lambda: (0, 0))],
            out_specs=pl.BlockSpec(x2d.shape, lambda: (0, 0)),
        )(x2d)
    else:
        # Large case: 1-D grid over lane-dense ~4 MiB blocks; default
        # double-buffered BlockSpec pipeline overlaps DMA with the VPU work.
        block_rows = max(
            _SUBLANE,
            (_TARGET_BLOCK_BYTES // (cols * x2d.dtype.itemsize))
            // _SUBLANE * _SUBLANE,
        )
        block_rows = min(block_rows, rows)
        grid = (pl.cdiv(rows, block_rows),)
        out2d = pl.pallas_call(
            _abs_kernel,
            out_shape=jax.ShapeDtypeStruct(x2d.shape, x2d.dtype),
            grid=grid,
            in_specs=[pl.BlockSpec((block_rows, cols), lambda i: (i, 0))],
            out_specs=pl.BlockSpec((block_rows, cols), lambda i: (i, 0)),
            compiler_params=pltpu.CompilerParams(
                dimension_semantics=("parallel",)),
        )(x2d)

    return out2d.reshape(orig_shape)


if __name__ == "__main__":
    key = jax.random.PRNGKey(0)
    # Small NCHW input consistent with the generic elementwise module.
    x = jax.random.normal(key, (2, 4, 16, 16), dtype=jnp.float32)

    y = pallas_abs(x)
    jax.block_until_ready(y)

    # Correctness check against the pure-JAX reference (== torch.abs semantics).
    ref = jnp.abs(x)
    assert y.shape == x.shape and y.dtype == x.dtype
    assert jnp.array_equal(y, ref)

    print("KERNEL_OK")
</pallas_src>

<mosaic_0001>
module attributes {stable_mosaic.version = 11 : i64} {
  func.func @_abs_kernel(%arg0: memref<8x256xf32, #tpu.memory_space<vmem>>, %arg1: memref<8x256xf32, #tpu.memory_space<vmem>>) attributes {dimension_semantics = [], scalar_prefetch = 0 : i64, scratch_operands = 0 : i64, tpu.core_type = #tpu.core_type<tc>} {
    %c0 = arith.constant 0 : index
    %c0_0 = arith.constant 0 : index
    %0 = vector.load %arg0[%c0, %c0_0] : memref<8x256xf32, #tpu.memory_space<vmem>>, vector<8x256xf32>
    %1 = math.absf %0 : vector<8x256xf32>
    %c0_1 = arith.constant 0 : index
    %c0_2 = arith.constant 0 : index
    %2 = vector.load %arg1[%c0_1, %c0_2] : memref<8x256xf32, #tpu.memory_space<vmem>>, vector<8x256xf32>
    tpu.vector_store %arg1[%c0_1, %c0_2], %1 {strides = array<i32>} : memref<8x256xf32, #tpu.memory_space<vmem>>, vector<8x256xf32>,
    return
  }
}

</mosaic_0001>

<bundles_post_ra>
// kernel: tpu_custom_call.1
= control target key start
LH: loop header
LB: loop body
LE: loop exit
PB: predicated region body
PF: predicated region fallthrough
CT: control target
= control target key end

     0   :  { %6 = vsyncpa [#allocation3], 0  ;;  %s128_s0 = inlined_call_operand.hbm [shape: f32[8,256], index: 0, kind: input, shape index: {}]   ;;  %s129_s1 = inlined_call_operand.hbm [shape: f32[8,256], index: 1, kind: output, shape index: {}]  }
   0x1   :  { %7 = vsyncpa [#allocation4], 0  ;;  %s92_s6 = smov [#allocation2]   ;;  %s44_s10 = scalar_lea.hbm %s128_s0, 256 }
   0x2   :  { %s14_s7 = sshll.u32 %s92_s6, 4  ;;  %p45_p0 = scmp.ne.s32.totalorder %s128_s0, %s44_s10  ;;  %s15_s7 = int_to_ptr.vmem [resolvable:$true] %s14_s7 }
   0x3   :  { %p48_p1 = scmp.lt.u32.totalorder %s44_s10, %s128_s0 }
   0x5   :  { %p50_p2 = pnand %p48_p1, %p45_p0 }
   0x7   :  { %53 = shalt.err (!%p50_p2)
}
   0x8   :  { %s54_s15 = scalar_lea.vmem %s15_s7, 256  ;;  %p59_p4 = scmp.lt.s32.totalorder %s15_s7, %s15_s7 }
   0x9   :  { %p55_p3 = scmp.ne.s32.totalorder %s15_s7, %s54_s15  ;;  %p60_p5 = scmp.lt.s32.totalorder %s54_s15, %s54_s15 }
   0xb   :  { %p61_p6 = por %p60_p5, %p59_p4 }
   0xd   :  { %p62_p7 = pnand %p61_p6, %p55_p3 }
   0xf   :  { %65 = shalt.err (!%p62_p7)
}
  0x10   :  { %17 = dma.hbm_to_vmem [thread:$0]  %s128_s0, 256, %s15_s7, [#allocation3]  }
  0x11   :  { %88 = dma.done.wait [#allocation3], 256  }
  0x12   :  { %89 = vsyncadd [#allocation3], 4294967040  ;;  %s93_s18 = smov [#allocation5]   ;;  %v21_v0 = vld [vmem:[#allocation2] sm:$0xff]  ;;  %v22_v1 = vld [vmem:[#allocation2 + $0x8] sm:$0xff] }
  0x13   :  { %s33_s19 = sshll.u32 %s93_s18, 4  ;;  %v23_v2 = vand.u32 2147483647, %v21_v0  ;;  %v24_v3 = vand.u32 2147483647, %v22_v1  ;;  %s34_s19 = int_to_ptr.vmem [resolvable:$true] %s33_s19 }
  0x14   :  { %s66_s20 = scalar_lea.vmem %s34_s19, 256  ;;  %p71_p9 = scmp.lt.s32.totalorder %s34_s19, %s34_s19 }
  0x15   :  { %25 = vst [vmem:[#allocation5] sm:$0xff] %v23_v2  ;;  %26 = vst [vmem:[#allocation5 + $0x8] sm:$0xff] %v24_v3  ;;  %p67_p8 = scmp.ne.s32.totalorder %s34_s19, %s66_s20  ;;  %p72_p10 = scmp.lt.s32.totalorder %s66_s20, %s66_s20 }
  0x17   :  { %p73_p11 = por %p72_p10, %p71_p9 }
  0x19   :  { %p74_p12 = pnand %p73_p11, %p67_p8 }
  0x1b   :  { %77 = shalt.err (!%p74_p12)
}
  0x1c   :  { %s78_s22 = scalar_lea.hbm %s129_s1, 256 }
  0x1d   :  { %p79_p13 = scmp.ne.s32.totalorder %s129_s1, %s78_s22  ;;  %p82_p0 = scmp.lt.u32.totalorder %s78_s22, %s129_s1 }
  0x1f   :  { %p84_p1 = pnand %p82_p0, %p79_p13 }
  0x21   :  { %87 = shalt.err (!%p84_p1)
}
  0x22   :  { %36 = dma.vmem_to_hbm [thread:$0]  %s34_s19, 256, %s129_s1, [#allocation4]  }
  0x23   :  { %90 = dma.done.wait [#allocation4], 256  }
  0x24   :  { %91 = vsyncadd [#allocation4], 4294967040 }
  0x25   :  { %40 = vsyncpa [#allocation3], 1 }
  0x26   :  { %41 = vsyncpa [#allocation4], 1 }

</bundles_post_ra>
